<compile_context>
chip_gen: v6e
topology: v6e:2x2x1
jax: 0.10.0
libtpu: 0.0.40
codegen_flags: <defaults>
</compile_context>

<pallas_src>
import functools

import jax
import jax.numpy as jnp
from jax.experimental import pallas as pl
from jax.experimental.pallas import tpu as pltpu

LANES = 128
SUBLANES = 8
_ALIGN = SUBLANES * LANES                  # 1024-element alignment for the kernel path
_TARGET_BLOCK_BYTES = 4 * 1024 * 1024      # ~4 MiB per input block
_VMEM_LIMIT_BYTES = 32 * 1024 * 1024       # 16 MiB pipelined + headroom; safe on v5e/v6e/v7x


def _multi_tensorcore_chip():
    """Best-effort: does one chip expose >1 TensorCore to a single kernel?"""
    try:
        kind = jax.devices()[0].device_kind.lower()
    except Exception:
        return False
    return any(tag in kind for tag in ("v4", "v5p", "v7"))


def _sse_kernel(orig_ref, prep_ref, out_ref, *, tile_rows, rows, steps,
                mask_possible):
    """Accumulate sum((orig - prep)^2) into a resident (1, 8, 128) output block."""
    c = pl.program_id(0)      # core-parallel slice (v7x); size 1 otherwise
    i = pl.program_id(1)      # reduction steps within a slice

    @pl.when(i == 0)
    def _():
        out_ref[...] = jnp.zeros_like(out_ref)

    d = orig_ref[...].astype(jnp.float32) - prep_ref[...].astype(jnp.float32)

    def accumulate(vals):
        sq = vals * vals
        # Cheap vreg-wise partial reduce: (tile_rows, 128) -> (8, 128); the
        # final cross-lane reduce of the tiny partials happens in plain JAX.
        partial = sq.reshape(tile_rows // SUBLANES, SUBLANES, LANES).sum(axis=0)
        out_ref[...] += partial[None, :, :]

    if not mask_possible:
        accumulate(d)
    else:
        blk = c * steps + i                     # logical block index
        full_blocks = rows // tile_rows         # blocks fully inside the data

        # Fast path: interior blocks, no mask ops at all.
        @pl.when(blk < full_blocks)
        def _():
            accumulate(d)

        # Tail path: block straddles / is past the rows boundary (includes the
        # clamped dummy step of an odd 2-way split, which masks to all-zero).
        @pl.when(blk >= full_blocks)
        def _():
            row0 = blk * tile_rows
            row_ids = row0 + jax.lax.broadcasted_iota(jnp.int32, d.shape, 0)
            accumulate(jnp.where(row_ids < rows, d, jnp.float32(0.0)))


def _sse_aligned(o2d, p2d):
    """Sum of squared differences over (rows, 128) arrays with rows % 8 == 0."""
    rows = o2d.shape[0]
    itemsize = max(o2d.dtype.itemsize, p2d.dtype.itemsize)
    max_rows = max(SUBLANES,
                   (_TARGET_BLOCK_BYTES // (LANES * itemsize)) // SUBLANES * SUBLANES)
    tile_rows = min(max_rows, rows)            # rows and max_rows are multiples of 8
    nblocks = pl.cdiv(rows, tile_rows)

    # 2-way core split only where a second TensorCore exists (v7x / v4 / v5p).
    num_slices = 2 if (nblocks >= 2 and _multi_tensorcore_chip()) else 1
    steps = pl.cdiv(nblocks, num_slices)

    has_partial_tail = (rows % tile_rows) != 0
    has_clamped = (num_slices * steps) != nblocks
    mask_possible = has_partial_tail or has_clamped

    if has_clamped:
        # Odd block count with a 2-way split: both slices issue `steps` DMAs
        # (balanced wall time); the one dummy step re-reads a valid block and
        # is fully masked out in the kernel.
        def in_map(c, i):
            return (jnp.minimum(c * steps + i, nblocks - 1), 0)
    else:
        def in_map(c, i):
            return (c * steps + i, 0)

    kernel = functools.partial(_sse_kernel, tile_rows=tile_rows, rows=rows,
                               steps=steps, mask_possible=mask_possible)

    out_bytes = num_slices * SUBLANES * LANES * 4
    cost = pl.CostEstimate(
        flops=3 * o2d.size,
        transcendentals=0,
        bytes_accessed=o2d.size * o2d.dtype.itemsize
        + p2d.size * p2d.dtype.itemsize + out_bytes)

    partials = pl.pallas_call(
        kernel,
        out_shape=jax.ShapeDtypeStruct((num_slices, SUBLANES, LANES), jnp.float32),
        grid_spec=pltpu.PrefetchScalarGridSpec(
            num_scalar_prefetch=0,
            grid=(num_slices, steps),
            in_specs=[
                pl.BlockSpec((tile_rows, LANES), in_map),
                pl.BlockSpec((tile_rows, LANES), in_map),
            ],
            out_specs=pl.BlockSpec((1, SUBLANES, LANES), lambda c, i: (c, 0, 0)),
        ),
        compiler_params=pltpu.CompilerParams(
            dimension_semantics=("parallel", "arbitrary"),
            vmem_limit_bytes=_VMEM_LIMIT_BYTES),
        cost_estimate=cost,
    )(o2d, p2d)

    return jnp.sum(partials)                   # tiny final reduce in plain JAX


@functools.partial(jax.jit, static_argnames=("lambda_distortion", "lambda_rate",
                                              "lambda_perception"))
def joint_rd_loss(original, preprocessed, estimated_rate, perceptual_loss=None,
                  *, lambda_distortion=1.0, lambda_rate=0.1,
                  lambda_perception=0.01):
    assert original.shape == preprocessed.shape
    numel = original.size

    o_flat = original.reshape(-1)
    p_flat = preprocessed.reshape(-1)

    # (8*128)-aligned prefix -> Pallas kernel (zero-copy reshape when aligned);
    # the <1024-element remainder (if any) is summed in plain JAX. No jnp.pad.
    main = (numel // _ALIGN) * _ALIGN
    sse = jnp.float32(0.0)
    if main > 0:
        if main == numel:
            o_main, p_main = o_flat, p_flat      # no slice copy in the common case
        else:
            o_main, p_main = o_flat[:main], p_flat[:main]
        rows = main // LANES
        sse = sse + _sse_aligned(o_main.reshape(rows, LANES),
                                 p_main.reshape(rows, LANES))
    if main < numel:
        d_rem = (o_flat[main:].astype(jnp.float32)
                 - p_flat[main:].astype(jnp.float32))
        sse = sse + jnp.sum(d_rem * d_rem)

    distortion_loss = sse / jnp.float32(numel)               # nn.MSELoss (mean)
    rate_loss = jnp.mean(jnp.asarray(estimated_rate, dtype=jnp.float32))

    total_loss = lambda_distortion * distortion_loss + lambda_rate * rate_loss
    if perceptual_loss is not None:
        total_loss = total_loss + lambda_perception * jnp.asarray(
            perceptual_loss, dtype=jnp.float32)

    return total_loss, distortion_loss, rate_loss


class JointRDLoss:
    """JAX/Pallas mirror of the PyTorch JointRDLoss module."""

    def __init__(self, lambda_distortion=1.0, lambda_rate=0.1,
                 lambda_perception=0.01):
        self.lambda_distortion = float(lambda_distortion)
        self.lambda_rate = float(lambda_rate)
        self.lambda_perception = float(lambda_perception)

    def __call__(self, original, preprocessed, estimated_rate,
                 perceptual_loss=None):
        total, dist, rate = joint_rd_loss(
            original, preprocessed, estimated_rate, perceptual_loss,
            lambda_distortion=self.lambda_distortion,
            lambda_rate=self.lambda_rate,
            lambda_perception=self.lambda_perception)
        # Keep device scalars (no .item()/float() host sync per step).
        stats = {
            'distortion_loss': dist,
            'rate_loss': rate,
            'perceptual_loss': (perceptual_loss if perceptual_loss is not None
                                else 0),
            'total_loss': total,
        }
        return total, stats


if __name__ == "__main__":
    key = jax.random.PRNGKey(0)
    k1, k2, k3, k4, k5, k6 = jax.random.split(key, 6)

    loss_fn = JointRDLoss(lambda_distortion=1.0, lambda_rate=0.1,
                          lambda_perception=0.01)

    # --- Case 1: lane/sublane-aligned NCHW video-frame-style input ----------
    B, C, H, W = 2, 4, 16, 16
    original = jax.random.normal(k1, (B, C, H, W), dtype=jnp.float32)
    preprocessed = original + 0.1 * jax.random.normal(k2, (B, C, H, W),
                                                      dtype=jnp.float32)
    estimated_rate = jax.random.uniform(k3, (B,), dtype=jnp.float32)
    perceptual_loss = jax.random.uniform(k4, (), dtype=jnp.float32)

    total, stats = loss_fn(original, preprocessed, estimated_rate,
                           perceptual_loss)
    jax.block_until_ready(total)

    ref_dist = jnp.mean((original - preprocessed) ** 2)
    ref_rate = jnp.mean(estimated_rate)
    ref_total = 1.0 * ref_dist + 0.1 * ref_rate + 0.01 * perceptual_loss
    assert abs(float(ref_dist) - float(stats['distortion_loss'])) < 1e-5, (
        float(ref_dist), float(stats['distortion_loss']))
    assert abs(float(ref_total) - float(stats['total_loss'])) < 1e-5, (
        float(ref_total), float(stats['total_loss']))

    # --- Case 2: misaligned element count (kernel prefix + JAX remainder) ---
    o2 = jax.random.normal(k5, (3, 5, 7, 11), dtype=jnp.float32)
    p2 = o2 + 0.05 * jax.random.normal(k6, (3, 5, 7, 11), dtype=jnp.float32)
    rate2 = jnp.asarray([0.3, 0.7, 0.2], dtype=jnp.float32)
    total2, stats2 = loss_fn(o2, p2, rate2, None)
    jax.block_until_ready(total2)

    ref_dist2 = jnp.mean((o2 - p2) ** 2)
    ref_total2 = 1.0 * ref_dist2 + 0.1 * jnp.mean(rate2)
    assert abs(float(ref_dist2) - float(stats2['distortion_loss'])) < 1e-5, (
        float(ref_dist2), float(stats2['distortion_loss']))
    assert abs(float(ref_total2) - float(stats2['total_loss'])) < 1e-5, (
        float(ref_total2), float(stats2['total_loss']))

    print("KERNEL_OK")
</pallas_src>

<mosaic_0001>
module attributes {stable_mosaic.version = 11 : i64} {
  func.func @_sse_kernel(%arg0: i32, %arg1: i32, %arg2: memref<16x128xf32, #tpu.memory_space<vmem>>, %arg3: memref<16x128xf32, #tpu.memory_space<vmem>>, %arg4: memref<1x8x128xf32, #tpu.memory_space<vmem>>) attributes {dimension_semantics = [#tpu.dimension_semantics<parallel>, #tpu.dimension_semantics<arbitrary>], iteration_bounds = array<i64: 1, 1>, scalar_prefetch = 0 : i64, scratch_operands = 0 : i64, tpu.core_type = #tpu.core_type<tc>, window_params = [{transform_indices = @transform_0, window_bounds = array<i64: 16, 128>}, {transform_indices = @transform_1, window_bounds = array<i64: 16, 128>}, {transform_indices = @transform_2, window_bounds = array<i64: 1, 8, 128>}]} {
    %c0_i32 = arith.constant 0 : i32
    %0 = arith.cmpi eq, %arg1, %c0_i32 : i32
    %1 = arith.extui %0 : i1 to i32
    %c0_i32_0 = arith.constant 0 : i32
    %2 = arith.cmpi ne, %1, %c0_i32_0 : i32
    scf.if %2 {
      %cst_10 = arith.constant 0.000000e+00 : f32
      %13 = vector.broadcast %cst_10 : f32 to vector<1x8x128xf32>
      %c0_11 = arith.constant 0 : index
      %c0_12 = arith.constant 0 : index
      %c0_13 = arith.constant 0 : index
      %14 = vector.load %arg4[%c0_11, %c0_12, %c0_13] : memref<1x8x128xf32, #tpu.memory_space<vmem>>, vector<1x8x128xf32>
      tpu.vector_store %arg4[%c0_11, %c0_12, %c0_13], %13 {strides = array<i32>} : memref<1x8x128xf32, #tpu.memory_space<vmem>>, vector<1x8x128xf32>,
    } else {
    }
    %c0 = arith.constant 0 : index
    %c0_1 = arith.constant 0 : index
    %3 = vector.load %arg2[%c0, %c0_1] : memref<16x128xf32, #tpu.memory_space<vmem>>, vector<16x128xf32>
    %c0_2 = arith.constant 0 : index
    %c0_3 = arith.constant 0 : index
    %4 = vector.load %arg3[%c0_2, %c0_3] : memref<16x128xf32, #tpu.memory_space<vmem>>, vector<16x128xf32>
    %5 = arith.subf %3, %4 : vector<16x128xf32>
    %6 = arith.mulf %5, %5 : vector<16x128xf32>
    %7 = vector.shape_cast %6 : vector<16x128xf32> to vector<2x8x128xf32>
    %cst = arith.constant dense<0.000000e+00> : vector<8x128xf32>
    %8 = vector.multi_reduction <add>, %7, %cst [0] : vector<2x8x128xf32> to vector<8x128xf32>
    %c0_4 = arith.constant 0 : index
    %c0_5 = arith.constant 0 : index
    %c0_6 = arith.constant 0 : index
    %9 = vector.load %arg4[%c0_4, %c0_5, %c0_6] : memref<1x8x128xf32, #tpu.memory_space<vmem>>, vector<1x8x128xf32>
    %10 = vector.shape_cast %8 : vector<8x128xf32> to vector<1x8x128xf32>
    %11 = arith.addf %9, %10 : vector<1x8x128xf32>
    %c0_7 = arith.constant 0 : index
    %c0_8 = arith.constant 0 : index
    %c0_9 = arith.constant 0 : index
    %12 = vector.load %arg4[%c0_7, %c0_8, %c0_9] : memref<1x8x128xf32, #tpu.memory_space<vmem>>, vector<1x8x128xf32>
    tpu.vector_store %arg4[%c0_7, %c0_8, %c0_9], %11 {strides = array<i32>} : memref<1x8x128xf32, #tpu.memory_space<vmem>>, vector<1x8x128xf32>,
    return
  }
  func.func @transform_0(%arg0: i32, %arg1: i32) -> (i32, i32) {
    %c1_i32 = arith.constant 1 : i32
    %0 = arith.muli %arg0, %c1_i32 : i32
    %1 = arith.addi %0, %arg1 : i32
    %c0_i32 = arith.constant 0 : i32
    %c0_i32_0 = arith.constant 0 : i32
    return %1, %c0_i32 : i32, i32
  }
  func.func @transform_1(%arg0: i32, %arg1: i32) -> (i32, i32) {
    %c1_i32 = arith.constant 1 : i32
    %0 = arith.muli %arg0, %c1_i32 : i32
    %1 = arith.addi %0, %arg1 : i32
    %c0_i32 = arith.constant 0 : i32
    %c0_i32_0 = arith.constant 0 : i32
    return %1, %c0_i32 : i32, i32
  }
  func.func @transform_2(%arg0: i32, %arg1: i32) -> (i32, i32, i32) {
    %c0_i32 = arith.constant 0 : i32
    %c0_i32_0 = arith.constant 0 : i32
    %c0_i32_1 = arith.constant 0 : i32
    return %arg0, %c0_i32, %c0_i32_0 : i32, i32, i32
  }
}

</mosaic_0001>

<bundles_post_ra>
// kernel: joint_rd_loss.1
= control target key start
LH: loop header
LB: loop body
LE: loop exit
PB: predicated region body
PF: predicated region fallthrough
CT: control target
= control target key end

     0   :  { %s119_s0 = inlined_call_operand.vmem [shape: f32[16,128], index: 0, kind: input, shape index: {}]   ;;  %s120_s1 = inlined_call_operand.vmem [shape: f32[16,128], index: 1, kind: input, shape index: {}]   ;;  %s121_s2 = inlined_call_operand.vmem [shape: f32[1,8,128], index: 2, kind: output, shape index: {}]  }
   0x1   :  { %v60_v0 = vld [vmem:[%s119_s0] sm:$0xff]  ;;  %v61_v1 = vld [vmem:[%s119_s0 + $0x8] sm:$0xff] }
   0x2   :  { %v62_v2 = vld [vmem:[%s120_s1] sm:$0xff]  ;;  %v63_v3 = vld [vmem:[%s120_s1 + $0x8] sm:$0xff] }
   0x3   :  { %v64_v4 = vsub.f32 %v60_v0, %v62_v2  ;;  %v65_v5 = vsub.f32 %v61_v1, %v63_v3 }
   0x5   :  { %v66_v6 = vmul.f32 %v64_v4, %v64_v4  ;;  %v67_v7 = vmul.f32 %v65_v5, %v65_v5 }
   0x7   :  { %v68_v8 = vadd.f32 %v67_v7, %v66_v6 }
   0x9   :  { %71 = vst [vmem:[%s121_s2] sm:$0xff] %v68_v8 }

</bundles_post_ra>
